<compile_context>
chip_gen: v7x
topology: tpu7x:2x2x1
jax: 0.10.0
libtpu: 0.0.40
codegen_flags: <defaults>
</compile_context>

<pallas_src>
import jax
import jax.numpy as jnp
from jax.experimental import pallas as pl
from jax.experimental.pallas import tpu as pltpu

_MiB = 1024 * 1024


def _round_up(a, b):
    return (a + b - 1) // b * b


def _cdiv(a, b):
    return (a + b - 1) // b


def _detect_tpu():
    """Best-effort (generation, per-core VMEM capacity) detection; always falls back safely."""
    gen = 0
    vmem_cap = 128 * _MiB
    try:
        info = pltpu.get_tpu_info()
        cap = getattr(info, "vmem_capacity_bytes", None)
        if cap:
            vmem_cap = int(cap)
    except Exception:
        pass
    try:
        kind = jax.devices()[0].device_kind.lower()
        for g in (7, 6, 5, 4):
            if f"v{g}" in kind:
                gen = g
                break
    except Exception:
        pass
    if gen == 7:
        vmem_cap = min(vmem_cap, 64 * _MiB)
    elif gen == 0 and vmem_cap <= 64 * _MiB:
        gen = 7
    return gen, vmem_cap


def _ffn_kernel_resident(x_ref, w1_ref, b1_ref, w2_ref, b2_ref, o_ref):
    # Whole hidden dimension resident in VMEM: no reduction grid axis, no accumulator scratch.
    h = jnp.dot(x_ref[...], w1_ref[...], preferred_element_type=jnp.float32) + b1_ref[...]
    h = jnp.maximum(h, 0.0)  # ReLU
    # TODO(synk): dropout omitted — module default p=0.0 / eval mode is the identity.
    o_ref[...] = (
        jnp.dot(h.astype(w2_ref.dtype), w2_ref[...], preferred_element_type=jnp.float32)
        + b2_ref[...]
    ).astype(o_ref.dtype)


def _ffn_kernel_tiled(x_ref, w1_ref, b1_ref, w2_ref, b2_ref, o_ref, acc_ref):
    # Hidden dimension tiled over grid axis 1 ("arbitrary") with an f32 VMEM accumulator.
    k = pl.program_id(1)

    @pl.when(k == 0)
    def _init():
        acc_ref[...] = jnp.zeros_like(acc_ref)

    h = jnp.dot(x_ref[...], w1_ref[...], preferred_element_type=jnp.float32) + b1_ref[...]
    h = jnp.maximum(h, 0.0)  # ReLU (elementwise over hidden -> exact under hidden tiling)
    acc_ref[...] += jnp.dot(h.astype(w2_ref.dtype), w2_ref[...],
                            preferred_element_type=jnp.float32)

    @pl.when(k == pl.num_programs(1) - 1)
    def _finalize():
        o_ref[...] = (acc_ref[...] + b2_ref[...]).astype(o_ref.dtype)


def feed_forward(x, w1, b1, w2, b2, *, compute_dtype="auto"):
    """x: (B, S, dim). w1: (dim, hidden), b1: (hidden,), w2: (hidden, dim), b2: (dim,)."""
    B, S, dim = x.shape
    hidden = w1.shape[1]
    out_dtype = x.dtype
    M = B * S

    if compute_dtype is None or (isinstance(compute_dtype, str) and compute_dtype == "auto"):
        compute_dtype = jnp.bfloat16 if x.dtype == jnp.float32 else x.dtype
    compute_dtype = jnp.dtype(compute_dtype)
    comp_isz = compute_dtype.itemsize
    out_isz = jnp.dtype(out_dtype).itemsize

    # --- per-generation policy -----------------------------------------------------
    gen, vmem_cap = _detect_tpu()
    if gen == 6:
        tm_target = 1024
        vmem_cap_limit = min(int(vmem_cap * 0.85), 110 * _MiB)
    elif gen == 7:
        tm_target = 512
        vmem_cap_limit = int(vmem_cap * 0.85)
    elif gen == 5:
        tm_target = 512
        vmem_cap_limit = min(int(vmem_cap * 0.80), 100 * _MiB)
    else:
        tm_target = 512
        vmem_cap_limit = min(int(vmem_cap * 0.85), 100 * _MiB)
    budget = int(vmem_cap_limit * 0.9)

    def vmem_need(tm_, tk_, tiled):
        need = 2 * tm_ * dim * comp_isz              # x tiles (double-buffered)
        need += 2 * tm_ * dim * out_isz              # output tiles
        need += 2 * dim * tk_ * comp_isz             # W1 (2 pipeline buffers)
        need += 2 * tk_ * dim * comp_isz             # W2
        need += 2 * 8 * _round_up(tk_, 128) * 4      # b1 (sublane/lane padded)
        need += 2 * 8 * _round_up(dim, 128) * 4      # b2
        need += tm_ * tk_ * 4 + tm_ * tk_ * comp_isz  # h (f32) + its cast copy for MXU #2
        if tiled:
            need += tm_ * dim * 4                    # f32 accumulator scratch
        return need

    # --- token-tile candidates (descending, multiples of 16, capped by token count) --
    tm_cap = max(_round_up(M, 16), 16)
    cands = []
    t = min(max(_round_up(tm_target, 16), 16), tm_cap)
    while t >= 16:
        if t not in cands:
            cands.append(t)
        if t == 16:
            break
        t = max(_round_up(t // 2, 16), 16)

    # --- tile selection: prefer grid-resident weights (n_k == 1) ---------------------
    use_resident = False
    tm_eff = tk_eff = None
    n_k = 1
    for cand in cands:
        if vmem_need(cand, hidden, False) <= budget:
            tm_eff, tk_eff, n_k, use_resident = cand, hidden, 1, True
            break
    if tm_eff is None:
        # Fallback: tile the hidden reduction axis (very large models / tight VMEM).
        h128 = _round_up(hidden, 128)
        tk_cands = sorted({min(c, h128) for c in (2048, 1024, 512, 256, 128)}, reverse=True)
        for cand in cands:
            for tk_ in tk_cands:
                if vmem_need(cand, tk_, True) <= budget:
                    tm_eff, tk_eff = cand, tk_
                    n_k = _round_up(hidden, tk_) // tk_
                    break
            if tm_eff is not None:
                break
    if tm_eff is None:
        tm_eff, tk_eff = 16, 128
        n_k = _round_up(hidden, 128) // 128

    n_i = _cdiv(M, tm_eff)
    # v7x has 2 TensorCores: make sure the "parallel" token axis has >= 2 tiles.
    if gen == 7 and n_i < 2 and M >= 32:
        tm_eff = max(_round_up(_cdiv(M, 2), 16), 16)
        n_i = _cdiv(M, tm_eff)

    # --- operand prep (no activation padding; weights only cast / hidden-padded) -----
    x2 = x.reshape(M, dim)
    if x2.dtype != compute_dtype:
        x2 = x2.astype(compute_dtype)  # keep activations in bf16 upstream to avoid this copy
    # For a jitted repeated forward pass, pre-cast the weights to bf16 once outside; the
    # astype below is then a no-op.
    w1c = w1 if w1.dtype == compute_dtype else w1.astype(compute_dtype)
    w2c = w2 if w2.dtype == compute_dtype else w2.astype(compute_dtype)
    b1f = b1.astype(jnp.float32).reshape(1, hidden)
    b2f = b2.astype(jnp.float32).reshape(1, dim)

    H_eff = hidden
    if not use_resident:
        H_eff = n_k * tk_eff
        if H_eff != hidden:  # zero padding along hidden is mathematically exact
            w1c = jnp.pad(w1c, ((0, 0), (0, H_eff - hidden)))
            w2c = jnp.pad(w2c, ((0, H_eff - hidden), (0, 0)))
            b1f = jnp.pad(b1f, ((0, 0), (0, H_eff - hidden)))

    need = vmem_need(tm_eff, tk_eff, not use_resident)
    vmem_limit = int(min(max(int(need * 1.25), 32 * _MiB), vmem_cap_limit))

    weight_passes = 1 if use_resident else n_i
    cost = pl.CostEstimate(
        flops=int(4 * M * dim * hidden),                 # two matmuls, real token count
        transcendentals=0,
        bytes_accessed=int(
            M * dim * (comp_isz + out_isz)
            + weight_passes * 2 * dim * H_eff * comp_isz
            + weight_passes * (H_eff + dim) * 4
        ),
    )

    if use_resident:
        out = pl.pallas_call(
            _ffn_kernel_resident,
            out_shape=jax.ShapeDtypeStruct((M, dim), out_dtype),
            grid_spec=pltpu.PrefetchScalarGridSpec(
                num_scalar_prefetch=0,
                grid=(n_i,),
                in_specs=[
                    pl.BlockSpec((tm_eff, dim), lambda i: (i, 0)),   # x token tile
                    pl.BlockSpec((dim, hidden), lambda i: (0, 0)),   # W1 (grid-resident)
                    pl.BlockSpec((1, hidden), lambda i: (0, 0)),     # b1
                    pl.BlockSpec((hidden, dim), lambda i: (0, 0)),   # W2 (grid-resident)
                    pl.BlockSpec((1, dim), lambda i: (0, 0)),        # b2
                ],
                out_specs=pl.BlockSpec((tm_eff, dim), lambda i: (i, 0)),
            ),
            compiler_params=pltpu.CompilerParams(
                dimension_semantics=("parallel",),
                vmem_limit_bytes=vmem_limit,
            ),
            cost_estimate=cost,
        )(x2, w1c, b1f, w2c, b2f)
    else:
        out = pl.pallas_call(
            _ffn_kernel_tiled,
            out_shape=jax.ShapeDtypeStruct((M, dim), out_dtype),
            grid_spec=pltpu.PrefetchScalarGridSpec(
                num_scalar_prefetch=0,
                grid=(n_i, n_k),
                in_specs=[
                    pl.BlockSpec((tm_eff, dim), lambda i, k: (i, 0)),   # x token tile
                    pl.BlockSpec((dim, tk_eff), lambda i, k: (0, k)),   # W1 hidden-tile
                    pl.BlockSpec((1, tk_eff), lambda i, k: (0, k)),     # b1 hidden-tile
                    pl.BlockSpec((tk_eff, dim), lambda i, k: (k, 0)),   # W2 hidden-tile
                    pl.BlockSpec((1, dim), lambda i, k: (0, 0)),        # b2 (full)
                ],
                out_specs=pl.BlockSpec((tm_eff, dim), lambda i, k: (i, 0)),
                scratch_shapes=[pltpu.VMEM((tm_eff, dim), jnp.float32)],
            ),
            compiler_params=pltpu.CompilerParams(
                dimension_semantics=("parallel", "arbitrary"),
                vmem_limit_bytes=vmem_limit,
            ),
            cost_estimate=cost,
        )(x2, w1c, b1f, w2c, b2f)

    return out.reshape(B, S, dim)


def _init_params(key, dim, hidden):
    # Deterministic init mimicking nn.Linear (uniform +/- 1/sqrt(fan_in)).
    k1, k2, k3, k4 = jax.random.split(key, 4)
    lim1 = 1.0 / jnp.sqrt(dim)
    lim2 = 1.0 / jnp.sqrt(hidden)
    w1 = jax.random.uniform(k1, (dim, hidden), jnp.float32, -lim1, lim1)
    b1 = jax.random.uniform(k2, (hidden,), jnp.float32, -lim1, lim1)
    w2 = jax.random.uniform(k3, (hidden, dim), jnp.float32, -lim2, lim2)
    b2 = jax.random.uniform(k4, (dim,), jnp.float32, -lim2, lim2)
    return w1, b1, w2, b2


if __name__ == "__main__":
    key = jax.random.PRNGKey(0)
    kx, kp = jax.random.split(key)

    B, S, dim, hidden = 2, 8, 32, 64
    x = jax.random.normal(kx, (B, S, dim), jnp.float32)
    w1, b1, w2, b2 = _init_params(kp, dim, hidden)

    # Plain-JAX reference.
    ref = jnp.maximum(x @ w1 + b1, 0.0) @ w2 + b2

    # Default path: bf16 MXU compute with f32 accumulation (per perf review).
    y = jax.block_until_ready(feed_forward(x, w1, b1, w2, b2))
    assert y.shape == (B, S, dim)
    assert jnp.allclose(y, ref, atol=1e-1, rtol=1e-1), "bf16 path mismatch vs reference"

    # Full-f32 compute path, tight tolerance.
    y32 = jax.block_until_ready(feed_forward(x, w1, b1, w2, b2, compute_dtype=jnp.float32))
    assert y32.shape == (B, S, dim)
    assert jnp.allclose(y32, ref, atol=1e-5, rtol=1e-5), "f32 path mismatch vs reference"

    print("KERNEL_OK")
</pallas_src>

<mosaic_0001>
module attributes {stable_mosaic.version = 11 : i64} {
  func.func @_ffn_kernel_resident(%arg0: i32, %arg1: memref<16x32xbf16, #tpu.memory_space<vmem>>, %arg2: memref<32x64xbf16, #tpu.memory_space<vmem>>, %arg3: memref<1x64xf32, #tpu.memory_space<vmem>>, %arg4: memref<64x32xbf16, #tpu.memory_space<vmem>>, %arg5: memref<1x32xf32, #tpu.memory_space<vmem>>, %arg6: memref<16x32xf32, #tpu.memory_space<vmem>>) attributes {dimension_semantics = [#tpu.dimension_semantics<parallel>], iteration_bounds = array<i64: 1>, scalar_prefetch = 0 : i64, scratch_operands = 0 : i64, tpu.core_type = #tpu.core_type<tc>, window_params = [{transform_indices = @transform_0, window_bounds = array<i64: 16, 32>}, {pipeline_mode = #tpu.pipeline_mode<synchronous>, transform_indices = @transform_1, window_bounds = array<i64: 32, 64>}, {pipeline_mode = #tpu.pipeline_mode<synchronous>, transform_indices = @transform_2, window_bounds = array<i64: 1, 64>}, {pipeline_mode = #tpu.pipeline_mode<synchronous>, transform_indices = @transform_3, window_bounds = array<i64: 64, 32>}, {pipeline_mode = #tpu.pipeline_mode<synchronous>, transform_indices = @transform_4, window_bounds = array<i64: 1, 32>}, {transform_indices = @transform_5, window_bounds = array<i64: 16, 32>}]} {
    %c0 = arith.constant 0 : index
    %c0_0 = arith.constant 0 : index
    %0 = vector.load %arg1[%c0, %c0_0] : memref<16x32xbf16, #tpu.memory_space<vmem>>, vector<16x32xbf16>
    %c0_1 = arith.constant 0 : index
    %c0_2 = arith.constant 0 : index
    %1 = vector.load %arg2[%c0_1, %c0_2] : memref<32x64xbf16, #tpu.memory_space<vmem>>, vector<32x64xbf16>
    %cst = arith.constant dense<0.000000e+00> : vector<16x64xf32>
    %2 = tpu.matmul %0, %1, %cst {dimension_numbers = #tpu.dot_dimension_numbers<[1], [0], [0], [1], [0, 0, 1, 1], [], []>} : vector<16x32xbf16>, vector<32x64xbf16>, vector<16x64xf32> -> vector<16x64xf32>
    %c0_3 = arith.constant 0 : index
    %c0_4 = arith.constant 0 : index
    %3 = vector.load %arg3[%c0_3, %c0_4] : memref<1x64xf32, #tpu.memory_space<vmem>>, vector<1x64xf32>
    %4 = vector.broadcast %3 : vector<1x64xf32> to vector<16x64xf32>
    %5 = arith.addf %2, %4 : vector<16x64xf32>
    %cst_5 = arith.constant 0.000000e+00 : f32
    %6 = vector.broadcast %cst_5 : f32 to vector<16x64xf32>
    %7 = arith.maximumf %5, %6 : vector<16x64xf32>
    %8 = arith.truncf %7 : vector<16x64xf32> to vector<16x64xbf16>
    %c0_6 = arith.constant 0 : index
    %c0_7 = arith.constant 0 : index
    %9 = vector.load %arg4[%c0_6, %c0_7] : memref<64x32xbf16, #tpu.memory_space<vmem>>, vector<64x32xbf16>
    %cst_8 = arith.constant dense<0.000000e+00> : vector<16x32xf32>
    %10 = tpu.matmul %8, %9, %cst_8 {dimension_numbers = #tpu.dot_dimension_numbers<[1], [0], [0], [1], [0, 0, 1, 1], [], []>} : vector<16x64xbf16>, vector<64x32xbf16>, vector<16x32xf32> -> vector<16x32xf32>
    %c0_9 = arith.constant 0 : index
    %c0_10 = arith.constant 0 : index
    %11 = vector.load %arg5[%c0_9, %c0_10] : memref<1x32xf32, #tpu.memory_space<vmem>>, vector<1x32xf32>
    %12 = vector.broadcast %11 : vector<1x32xf32> to vector<16x32xf32>
    %13 = arith.addf %10, %12 : vector<16x32xf32>
    %c0_11 = arith.constant 0 : index
    %c0_12 = arith.constant 0 : index
    %14 = vector.load %arg6[%c0_11, %c0_12] : memref<16x32xf32, #tpu.memory_space<vmem>>, vector<16x32xf32>
    tpu.vector_store %arg6[%c0_11, %c0_12], %13 {strides = array<i32>} : memref<16x32xf32, #tpu.memory_space<vmem>>, vector<16x32xf32>,
    return
  }
  func.func @transform_0(%arg0: i32) -> (i32, i32) {
    %c0_i32 = arith.constant 0 : i32
    %c0_i32_0 = arith.constant 0 : i32
    return %arg0, %c0_i32 : i32, i32
  }
  func.func @transform_1(%arg0: i32) -> (i32, i32) {
    %c0_i32 = arith.constant 0 : i32
    %c0_i32_0 = arith.constant 0 : i32
    %c0_i32_1 = arith.constant 0 : i32
    return %c0_i32, %c0_i32_0 : i32, i32
  }
  func.func @transform_2(%arg0: i32) -> (i32, i32) {
    %c0_i32 = arith.constant 0 : i32
    %c0_i32_0 = arith.constant 0 : i32
    %c0_i32_1 = arith.constant 0 : i32
    return %c0_i32, %c0_i32_0 : i32, i32
  }
  func.func @transform_3(%arg0: i32) -> (i32, i32) {
    %c0_i32 = arith.constant 0 : i32
    %c0_i32_0 = arith.constant 0 : i32
    %c0_i32_1 = arith.constant 0 : i32
    return %c0_i32, %c0_i32_0 : i32, i32
  }
  func.func @transform_4(%arg0: i32) -> (i32, i32) {
    %c0_i32 = arith.constant 0 : i32
    %c0_i32_0 = arith.constant 0 : i32
    %c0_i32_1 = arith.constant 0 : i32
    return %c0_i32, %c0_i32_0 : i32, i32
  }
  func.func @transform_5(%arg0: i32) -> (i32, i32) {
    %c0_i32 = arith.constant 0 : i32
    %c0_i32_0 = arith.constant 0 : i32
    return %arg0, %c0_i32 : i32, i32
  }
}

</mosaic_0001>

<bundles_post_ra>
// kernel: tpu_custom_call.1
= control target key start
LH: loop header
LB: loop body
LE: loop exit
PB: predicated region body
PF: predicated region fallthrough
CT: control target
= control target key end

     0   :  { %v277_v1 = vmov 0.0   ;;  %vm278_vm0 = vmmov 0   ;;  %vm52_vm1 = vcmask 261120   ;;  %s354_s0 = inlined_call_operand.vmem [shape: bf16[16,32], index: 0, kind: input, shape index: {}]   ;;  %s355_s1 = inlined_call_operand.vmem [shape: bf16[32,64], index: 1, kind: input, shape index: {}]   ;;  %s356_s2 = inlined_call_operand.vmem [shape: f32[1,64], index: 2, kind: input, shape index: {}]   ;;  %s357_s3 = inlined_call_operand.vmem [shape: bf16[64,32], index: 3, kind: input, shape index: {}]   ;;  %s358_s4 = inlined_call_operand.vmem [shape: f32[1,32], index: 4, kind: input, shape index: {}]   ;;  %s359_s5 = inlined_call_operand.hbm [shape: f32[16,32], index: 5, kind: output, shape index: {}]  }
   0x1   :  { %v246_v0 = vld [vmem:[%s355_s1] sm:$0xff]   ;;  %221 = vmatprep.subr.bf16.mxu0 %v277_v1  ;;  %229 = vmatprep.subr.bf16.mxu1 %v277_v1  ;;  %v247_v2 = vld [vmem:[%s355_s1 + $0x8] sm:$0xff]  }
   0x2   :  { %222 = vmatpush3.bf16.msra.mxu0 %v246_v0  ;;  %225 = vmatprep.mubr.msk.bf16.mxu0 %vm278_vm0, %v277_v1  ;;  %v249_v3 = vld [vmem:[%s357_s3] sm:$0xff]   ;;  %v250_v5 = vld [vmem:[%s357_s3 + $0x8] sm:$0xff]  }
   0x3   :  { %223 = vmatprep.subr.bf16.mxu0 %v277_v1  ;;  %237 = vmatprep.mubr.msk.bf16.mxu1 %vm278_vm0, %v277_v1  ;;  %v248_v4 = vld [vmem:[%s354_s0] sm:$0xff]  }
   0x4   :  { %230 = vmatpush3.bf16.msra.mxu1 %v249_v3 }
   0x5   :  { %231 = vmatprep.subr.bf16.mxu1 %v277_v1 }
   0x6   :  { %224 = vmatpush3.bf16.msra.mxu0 %v247_v2 }
   0x7   :  { %10 = vsyncpa [#allocation3], 0  ;;  %v251_v6 = vld [vmem:[%s357_s3 + $0x10] sm:$0xff]   ;;  %v252_v7 = vld [vmem:[%s357_s3 + $0x18] sm:$0xff]   ;;  %vm139_vm2 = vcmask 523264   ;;  %s279_s3 = smov [#allocation2]  }
   0x8   :  { %232 = vmatpush3.bf16.msra.mxu1 %v250_v5  ;;  %v202_v8 = vld [vmem:[%s356_s2] ss:$0 sm:$0xff]  ;;  %s191_s9 = sshll.u32 %s279_s3, 4  ;;  %s192_s9 = int_to_ptr.vmem [resolvable:$true] %s191_s9 }
   0x9   :  { %226 = vmatmul.mubr.msk.bf16.vlgmr.msra.gmra.mrb[0].mxu0 %vm52_vm1, %v248_v4  ;;  %233 = vmatprep.subr.bf16.mxu1 %v277_v1  ;;  %v207_v18 = vld [vmem:[%s358_s4] ss:$0 sm:$0xff]  ;;  %s253_s2 = scalar_lea.vmem %s192_s9, 256  ;;  %p258_p1 = scmp.lt.s32.totalorder %s192_s9, %s192_s9 }
   0xa   :  { %p254_p0 = scmp.ne.s32.totalorder %s192_s9, %s253_s2  ;;  %p259_p2 = scmp.lt.s32.totalorder %s253_s2, %s253_s2 }
   0xc   :  { %234 = vmatpush3.bf16.msra.mxu1 %v251_v6  ;;  %p260_p3 = por %p259_p2, %p258_p1 }
   0xd   :  { %235 = vmatprep.subr.bf16.mxu1 %v277_v1 }
   0xe   :  { %p261_p4 = pnand %p260_p3, %p254_p0 }
  0x10   :  { %236 = vmatpush3.bf16.msra.mxu1 %v252_v7 }
  0xdc   :  { %v90_v9 = vpop.f32.mrb[0].mxu0 }
  0xdd   :  { %v91_v10 = vadd.f32 %v202_v8, %v90_v9  ;;  %v227_v11 = vpop.f32.mrb[1].mxu0 }
  0xde   :  { %v93_v12 = vpop.f32.mrb[2].mxu0 }
  0xdf   :  { %v94_v13 = vadd.f32 %v202_v8, %v93_v12  ;;  %v228_v14 = vpop.f32.mrb[3].mxu0  ;;  %v97_v15 = vmax.f32 %v91_v10, 0.0 }
  0xe1   :  { %v98_v16 = vmax.f32 %v94_v13, 0.0 }
  0xe3   :  { %v99_v17 = vpack.c.bf16 %v98_v16, %v97_v15 }
  0xe5   :  { %238 = vmatmul.mubr.msk.bf16.vlgmr.msra.gmra.mrb[0].mxu1 %vm139_vm2, %v99_v17 }
 0x1b8   :  { %v177_v19 = vpop.f32.mrb[0].mxu1 }
 0x1b9   :  { %v178_v20 = vadd.f32 %v207_v18, %v177_v19  ;;  %v239_v21 = vpop.f32.mrb[1].mxu1 }
 0x1ba   :  { %v180_v22 = vpop.f32.mrb[2].mxu1 }
 0x1bb   :  { %184 = vst.msk [vmem:[#allocation2] sm:$0xff] %vm52_vm1, %v178_v20  ;;  %v181_v23 = vadd.f32 %v207_v18, %v180_v22  ;;  %v240_v24 = vpop.f32.mrb[3].mxu1 }
 0x1bd   :  { %185 = vst.msk [vmem:[#allocation2 + $0x8] sm:$0xff] %vm52_vm1, %v181_v23 }
 0x1be   :  { %264 = shalt.err (!%p261_p4)
}
 0x1bf   :  { %s265_s11 = scalar_lea.hbm %s359_s5, 256 }
 0x1c0   :  { %p266_p5 = scmp.ne.s32.totalorder %s359_s5, %s265_s11  ;;  %p269_p6 = scmp.lt.u32.totalorder %s265_s11, %s359_s5 }
 0x1c2   :  { %p271_p7 = pnand %p269_p6, %p266_p5 }
 0x1c4   :  { %274 = shalt.err (!%p271_p7)
}
 0x1c5   :  { %s280_s16 = smov 128   ;;  %s281_s17 = smov 8  }
 0x1c6   :  { %197 = dma.vmem_to_hbm [thread:$0]  %s192_s9, 256, %s359_s5, [#allocation3], %s280_s16, %s280_s16, %s281_s17  }
 0x1c7   :  { %275 = dma.done.wait [#allocation3], 256  }
 0x1c8   :  { %276 = vsyncadd [#allocation3], 4294967040 }
 0x1c9   :  { %201 = vsyncpa [#allocation3], 1 }

</bundles_post_ra>
